<compile_context>
chip_gen: v7x
topology: tpu7x:2x2x1
jax: 0.10.0
libtpu: 0.0.40
codegen_flags: <defaults>
</compile_context>

<pallas_src>
import jax
import jax.numpy as jnp
from jax.experimental import pallas as pl
from jax.experimental.pallas import tpu as pltpu

# config defaults from CombinedLoss.__init__ (get_config defaults)
NUM_CLASSES = 40
LABEL_SMOOTHING = 0.1
FOCAL_ALPHA = 0.25
FOCAL_GAMMA = 2.0
CE_WEIGHT = 1.0
CTC_WEIGHT = 0.0          # ctc_weight = 0.0 in the module
LM_WEIGHT = 0.1
PAD_TOKEN = 0

MAX_ROWS_PER_STEP = 4096          # (batch*seq) rows per grid step
ROW_ALIGN = 16                    # sublane alignment that covers f32 (8) and bf16 (16)
VMEM_LIMIT_BYTES = 32 * 1024 * 1024


def _round_up(x, m):
    return (x + m - 1) // m * m


def _make_kernel(n_classes, has_lm):
    """Streaming masked-sum reduction over row tiles.

    Per step: log-softmax pieces over classes, per-row label-smoothed CE, focal loss and
    (optionally) LM CE, accumulated with one select-masked add into a single merged
    (tm, n_cols) VMEM accumulator; the cross-sublane reductions and SMEM scalar stores
    happen only once, on the last grid step.
    """
    n_cols = 4 if has_lm else 3          # [ce, focal, (lm,) count]
    inv_c = 1.0 / float(n_classes)

    def kernel(*refs):
        if has_lm:
            logits_ref, lm_ref, tgt_ref, out_ref, acc_ref = refs
        else:
            logits_ref, tgt_ref, out_ref, acc_ref = refs
            lm_ref = None

        step = pl.program_id(0)

        @pl.when(step == 0)
        def _():
            acc_ref[...] = jnp.zeros_like(acc_ref)

        x = logits_ref[...].astype(jnp.float32)        # (tm, C), native dtype -> f32 on VPU
        tgt = tgt_ref[...]                             # (tm, 1) int32

        # Row validity: the target plane is zero-padded by the wrapper, so pad tokens, the
        # teacher-shift tail AND garbage rows of a ragged trailing block all read 0 here.
        valid = tgt != PAD_TOKEN                       # (tm, 1) bool

        lane = jax.lax.broadcasted_iota(jnp.int32, x.shape, 1)
        hit = lane == tgt                              # (tm, C) one-hot mask

        # log-softmax pieces without materializing logp
        z = x - jnp.max(x, axis=-1, keepdims=True)
        lse = jnp.log(jnp.sum(jnp.exp(z), axis=-1, keepdims=True))
        tgt_z = jnp.sum(jnp.where(hit, z, 0.0), axis=-1, keepdims=True)
        nll = lse - tgt_z                              # plain CE per row
        # torch CE(label_smoothing=s): (1-s)*nll + (s/C)*sum_c(-log p_c)
        smooth = lse - jnp.sum(z, axis=-1, keepdims=True) * inv_c
        ce_row = (1.0 - LABEL_SMOOTHING) * nll + LABEL_SMOOTHING * smooth

        # Focal loss (plain CE inside): alpha * (1 - pt)^gamma * ce
        pt = jnp.exp(-nll)
        omp = 1.0 - pt
        fpow = omp * omp if FOCAL_GAMMA == 2.0 else omp ** FOCAL_GAMMA
        fl_row = FOCAL_ALPHA * fpow * nll

        if has_lm:
            xl = lm_ref[...].astype(jnp.float32)
            zl = xl - jnp.max(xl, axis=-1, keepdims=True)
            lsel = jnp.log(jnp.sum(jnp.exp(zl), axis=-1, keepdims=True))
            lm_row = lsel - jnp.sum(jnp.where(hit, zl, 0.0), axis=-1, keepdims=True)

        # Stack the per-row columns into one (tm, n_cols) value and do a SINGLE
        # select-masked accumulate into the merged accumulator.  Select (not multiply) so
        # NaN/Inf from garbage rows of a partial trailing block cannot leak through.
        col = jax.lax.broadcasted_iota(jnp.int32, (x.shape[0], n_cols), 1)
        one = jnp.float32(1.0)
        if has_lm:
            vals = jnp.where(col == 0, ce_row,
                             jnp.where(col == 1, fl_row,
                                       jnp.where(col == 2, lm_row, one)))
        else:
            vals = jnp.where(col == 0, ce_row, jnp.where(col == 1, fl_row, one))
        acc_ref[...] += jnp.where(valid, vals, jnp.float32(0.0))

        @pl.when(step == pl.num_programs(0) - 1)
        def _():
            acc = acc_ref[...]
            sel = jax.lax.broadcasted_iota(jnp.int32, acc.shape, 1)
            zero = jnp.zeros_like(acc)
            out_ref[0, 0] = jnp.sum(jnp.where(sel == 0, acc, zero))   # ce sum
            out_ref[0, 1] = jnp.sum(jnp.where(sel == 1, acc, zero))   # focal sum
            if has_lm:
                out_ref[0, 2] = jnp.sum(jnp.where(sel == 2, acc, zero))  # lm sum
                out_ref[0, 3] = jnp.sum(jnp.where(sel == 3, acc, zero))  # valid count
            else:
                out_ref[0, 2] = jnp.float32(0.0)
                out_ref[0, 3] = jnp.sum(jnp.where(sel == 2, acc, zero))  # valid count

    return kernel


def _loss_sums(logits_flat, lm_flat, tgt_flat, tm, grid):
    """Run the Pallas reduction; returns (ce_sum, focal_sum, lm_sum, valid_count)."""
    N, C = logits_flat.shape
    has_lm = lm_flat is not None
    n_cols = 4 if has_lm else 3

    in_specs = [pl.BlockSpec((tm, C), lambda i: (i, 0))]          # logits tile (native dtype)
    inputs = [logits_flat]
    if has_lm:
        in_specs.append(pl.BlockSpec((tm, C), lambda i: (i, 0)))  # lm logits tile
        inputs.append(lm_flat)
    # TODO(synk): (tm,1) int32 targets pad to 128 lanes in VMEM; a lane-major / class-major
    # redesign (v7x follow-up) would make this tile dense.
    in_specs.append(pl.BlockSpec((tm, 1), lambda i: (i, 0)))      # zero-padded target column
    inputs.append(tgt_flat)

    n_inp = 2 if has_lm else 1
    cost = pl.CostEstimate(
        flops=int(N) * C * 8 * n_inp,
        transcendentals=int(N) * C * n_inp,
        bytes_accessed=int(N) * C * logits_flat.dtype.itemsize * n_inp + int(N) * 4 + 16,
    )

    acc = pl.pallas_call(
        _make_kernel(C, has_lm),
        out_shape=jax.ShapeDtypeStruct((1, 4), jnp.float32),
        grid=(grid,),
        in_specs=in_specs,
        out_specs=pl.BlockSpec((1, 4), lambda i: (0, 0),
                               memory_space=pltpu.MemorySpace.SMEM),
        scratch_shapes=[pltpu.VMEM((tm, n_cols), jnp.float32)],   # merged accumulator
        compiler_params=pltpu.CompilerParams(
            # TODO(synk): on v7x, split the row-tile axis over the two TensorCores
            # ("parallel" + per-core partial outputs); kept sequential here so a single
            # global accumulator / last-step write-out stays correct on all generations.
            dimension_semantics=("arbitrary",),
            vmem_limit_bytes=VMEM_LIMIT_BYTES,
        ),
        cost_estimate=cost,
    )(*inputs)
    return acc[0, 0], acc[0, 1], acc[0, 2], acc[0, 3]


def combined_loss(predictions, targets, lm_outputs=None):
    """JAX/Pallas port of CombinedLoss.forward (loss_type='combined')."""
    # _validate_targets: clamp into [0, num_classes-1]; negatives collapse to PAD (=0) and
    # get masked, matching torch.clamp + ignore_index=0 semantics.
    targets = jnp.clip(targets.astype(jnp.int32), 0, NUM_CLASSES - 1)

    # batch alignment
    bs = min(predictions.shape[0], targets.shape[0])
    if predictions.shape[0] != bs:
        predictions = predictions[:bs]
    if targets.shape[0] != bs:
        targets = targets[:bs]
    if lm_outputs is not None and lm_outputs.shape[0] != bs:
        lm_outputs = lm_outputs[:bs]

    B, L = targets.shape
    ce_targets = targets[:, 1:] if L > 1 else targets          # teacher-forcing shift
    tgt_len = ce_targets.shape[1]
    C = predictions.shape[-1]

    # torch zero-pads predictions that are shorter than the shifted targets (rare copy)
    if predictions.shape[1] < tgt_len:
        pad = jnp.zeros((B, tgt_len - predictions.shape[1], C), predictions.dtype)
        predictions = jnp.concatenate([predictions, pad], axis=1)

    # LM loss is only computed when the LM head covers the full shifted-target range; the
    # torch path otherwise raises inside the masked gather and keeps lm_loss = 0.
    lm = lm_outputs if (lm_outputs is not None and lm_outputs.shape[1] >= tgt_len) else None
    has_lm = lm is not None
    if has_lm and lm.shape[1] != predictions.shape[1]:
        # rare length mismatch: align seq dims so both tensors share one flattened tiling
        m = min(predictions.shape[1], lm.shape[1])             # >= tgt_len
        predictions = predictions[:, :m]
        lm = lm[:, :m]
    Lp = predictions.shape[1]

    # Only copy-trim when predictions run far past the targets; otherwise stream the
    # original tensors untouched and mask the (few) unused positions in-kernel.
    trimmed = max(_round_up(tgt_len, ROW_ALIGN), ROW_ALIGN)
    if Lp > 2 * trimmed:
        predictions = predictions[:, :trimmed]
        if has_lm:
            lm = lm[:, :trimmed]
        Lp = trimmed

    N = B * Lp
    # Free (bitcast) reshape of the full tensors -- no sliced/padded HBM copy of the logits.
    logits_flat = predictions.reshape(N, C)
    lm_flat = lm.reshape(N, C) if has_lm else None

    tm = N if N <= MAX_ROWS_PER_STEP else MAX_ROWS_PER_STEP
    grid = pl.cdiv(N, tm)

    # Tiny int32 target plane: 0 (== PAD) everywhere outside [0, tgt_len) per row and beyond
    # the real rows, so one in-kernel mask covers pad tokens, the teacher-shift tail and the
    # ragged trailing grid block.
    tgt_full = jnp.zeros((B, Lp), jnp.int32).at[:, :tgt_len].set(ce_targets)
    tgt_flat = tgt_full.reshape(N, 1)
    if grid * tm > N:
        tgt_flat = jnp.pad(tgt_flat, ((0, grid * tm - N), (0, 0)))

    ce_sum, fl_sum, lm_sum, cnt = _loss_sums(logits_flat, lm_flat, tgt_flat, tm, grid)

    denom = jnp.maximum(cnt, 1.0)
    any_valid = cnt > 0
    zero = jnp.float32(0.0)

    def _sane(x):  # nan/inf guard, mirrors the torch.isnan/isinf checks
        return jnp.where(jnp.isfinite(x), x, zero)

    ce_loss = _sane(jnp.where(any_valid, ce_sum / denom, zero))
    focal_loss = _sane(jnp.where(any_valid, fl_sum / denom, zero))
    lm_loss = _sane(jnp.where(any_valid, lm_sum / denom, zero)) if has_lm else zero
    ctc_loss = zero  # TODO(synk): CTC branch has weight 0.0 and is never computed in the module.
    total = _sane(CE_WEIGHT * ce_loss + CTC_WEIGHT * ctc_loss + LM_WEIGHT * lm_loss)

    return {
        'total_loss': total,
        'cross_entropy_loss': ce_loss,
        'focal_loss': focal_loss,
        'ctc_loss': ctc_loss,
        'lm_loss': lm_loss,
    }


def _reference_loss(predictions, targets, lm_outputs):
    """Pure-JAX reference of the same math (sanity check only)."""
    targets = jnp.clip(targets.astype(jnp.int32), 0, NUM_CLASSES - 1)
    ce_t = targets[:, 1:] if targets.shape[1] > 1 else targets
    S = ce_t.shape[1]
    C = predictions.shape[-1]
    preds = predictions
    if preds.shape[1] < S:
        pad = jnp.zeros((preds.shape[0], S - preds.shape[1], C), preds.dtype)
        preds = jnp.concatenate([preds, pad], axis=1)
    logits = preds[:, :S, :].reshape(-1, C).astype(jnp.float32)
    t = ce_t.reshape(-1)
    m = (t != PAD_TOKEN).astype(jnp.float32)
    logp = jax.nn.log_softmax(logits, axis=-1)
    nll = -jnp.take_along_axis(logp, t[:, None], axis=-1)[:, 0]
    smooth = -jnp.mean(logp, axis=-1)
    ce_row = (1 - LABEL_SMOOTHING) * nll + LABEL_SMOOTHING * smooth
    pt = jnp.exp(-nll)
    fl_row = FOCAL_ALPHA * (1 - pt) ** FOCAL_GAMMA * nll
    cnt = m.sum()
    ce = (ce_row * m).sum() / cnt
    fl = (fl_row * m).sum() / cnt
    if lm_outputs is not None and lm_outputs.shape[1] >= S:
        lm_logits = lm_outputs[:, :S, :].reshape(-1, C).astype(jnp.float32)
        lm_logp = jax.nn.log_softmax(lm_logits, axis=-1)
        lm_row = -jnp.take_along_axis(lm_logp, t[:, None], axis=-1)[:, 0]
        lm = (lm_row * m).sum() / cnt
    else:
        lm = jnp.float32(0.0)
    return {'total_loss': CE_WEIGHT * ce + LM_WEIGHT * lm,
            'cross_entropy_loss': ce, 'focal_loss': fl, 'lm_loss': lm}


def _check(out, ref, keys, tol=3e-3):
    for k in keys:
        a, b = float(out[k]), float(ref[k])
        assert abs(a - b) < tol, (k, a, b)


if __name__ == "__main__":
    key = jax.random.PRNGKey(0)
    ks = jax.random.split(key, 10)
    C = NUM_CLASSES
    all_keys = ('total_loss', 'cross_entropy_loss', 'focal_loss', 'lm_loss')

    # --- test 1: small shapes, with LM head (single grid step) -------------------------
    B, L = 2, 8
    preds = jax.random.normal(ks[0], (B, L, C), jnp.float32)
    lm = jax.random.normal(ks[1], (B, L, C), jnp.float32)
    tgts = jax.random.randint(ks[2], (B, L), 3, C)
    tgts = tgts.at[:, 0].set(1)    # sos
    tgts = tgts.at[:, 5].set(2)    # eos
    tgts = tgts.at[:, 6:].set(0)   # pad
    tgts = tgts.astype(jnp.int32)

    out = jax.tree_util.tree_map(jax.block_until_ready, combined_loss(preds, tgts, lm))
    _check(out, _reference_loss(preds, tgts, lm), all_keys)

    # --- test 2: no LM head (separate kernel variant, no lm DMA, 3-column accumulator) -
    out2 = jax.tree_util.tree_map(jax.block_until_ready, combined_loss(preds, tgts, None))
    ref2 = _reference_loss(preds, tgts, None)
    _check(out2, ref2, all_keys)
    assert float(out2['lm_loss']) == 0.0

    # --- test 3: bf16 inputs, multi-step grid with a ragged trailing block -------------
    B3, L3 = 5, 1204
    preds3 = jax.random.normal(ks[3], (B3, L3, C), jnp.float32).astype(jnp.bfloat16)
    lm3 = jax.random.normal(ks[4], (B3, L3, C), jnp.float32).astype(jnp.bfloat16)
    tgts3 = jax.random.randint(ks[5], (B3, L3), 0, C).astype(jnp.int32)
    tgts3 = tgts3.at[:, 0].set(1)
    out3 = jax.tree_util.tree_map(jax.block_until_ready, combined_loss(preds3, tgts3, lm3))
    _check(out3, _reference_loss(preds3, tgts3, lm3), all_keys, tol=5e-3)

    # --- test 4: long f32 sequences -> several 4096-row steps, ragged tail -------------
    B4, L4 = 2, 4200
    preds4 = jax.random.normal(ks[6], (B4, L4, C), jnp.float32)
    lm4 = jax.random.normal(ks[7], (B4, L4, C), jnp.float32)
    tgts4 = jax.random.randint(ks[8], (B4, L4), 0, C).astype(jnp.int32)
    tgts4 = tgts4.at[:, 0].set(1)
    out4 = jax.tree_util.tree_map(jax.block_until_ready, combined_loss(preds4, tgts4, lm4))
    _check(out4, _reference_loss(preds4, tgts4, lm4), all_keys)

    # --- test 5: LM head shorter than the shifted targets -> lm_loss stays 0 -----------
    out5 = jax.tree_util.tree_map(jax.block_until_ready,
                                  combined_loss(preds, tgts, lm[:, :5, :]))
    assert float(out5['lm_loss']) == 0.0
    _check(out5, ref2, ('cross_entropy_loss', 'focal_loss', 'total_loss'))

    print("KERNEL_OK")
</pallas_src>

<mosaic_0001>
module attributes {stable_mosaic.version = 11 : i64} {
  func.func @kernel(%arg0: i32, %arg1: memref<16x40xf32, #tpu.memory_space<vmem>>, %arg2: memref<16x40xf32, #tpu.memory_space<vmem>>, %arg3: memref<16x1xi32, #tpu.memory_space<vmem>>, %arg4: memref<1x4xf32, #tpu.memory_space<smem>>, %arg5: memref<16x4xf32, #tpu.memory_space<vmem>>) attributes {dimension_semantics = [#tpu.dimension_semantics<arbitrary>], iteration_bounds = array<i64: 1>, scalar_prefetch = 0 : i64, scratch_operands = 1 : i64, tpu.core_type = #tpu.core_type<tc>, window_params = [{transform_indices = @transform_0, window_bounds = array<i64: 16, 40>}, {transform_indices = @transform_1, window_bounds = array<i64: 16, 40>}, {transform_indices = @transform_2, window_bounds = array<i64: 16, 1>}, {transform_indices = @transform_3, window_bounds = array<i64: 1, 4>}]} {
    %c0_i32 = arith.constant 0 : i32
    %0 = arith.cmpi eq, %arg0, %c0_i32 : i32
    %1 = arith.extui %0 : i1 to i32
    %c0_i32_0 = arith.constant 0 : i32
    %2 = arith.cmpi ne, %1, %c0_i32_0 : i32
    scf.if %2 {
      %cst_30 = arith.constant 0.000000e+00 : f32
      %83 = vector.broadcast %cst_30 : f32 to vector<16x4xf32>
      %c0_31 = arith.constant 0 : index
      %c0_32 = arith.constant 0 : index
      %84 = vector.load %arg5[%c0_31, %c0_32] : memref<16x4xf32, #tpu.memory_space<vmem>>, vector<16x4xf32>
      tpu.vector_store %arg5[%c0_31, %c0_32], %83 {strides = array<i32>} : memref<16x4xf32, #tpu.memory_space<vmem>>, vector<16x4xf32>,
    } else {
    }
    %c0 = arith.constant 0 : index
    %c0_1 = arith.constant 0 : index
    %3 = vector.load %arg1[%c0, %c0_1] : memref<16x40xf32, #tpu.memory_space<vmem>>, vector<16x40xf32>
    %c0_2 = arith.constant 0 : index
    %c0_3 = arith.constant 0 : index
    %4 = vector.load %arg3[%c0_2, %c0_3] : memref<16x1xi32, #tpu.memory_space<vmem>>, vector<16x1xi32>
    %c0_i32_4 = arith.constant 0 : i32
    %5 = vector.broadcast %c0_i32_4 : i32 to vector<16x1xi32>
    %6 = arith.cmpi ne, %4, %5 : vector<16x1xi32>
    %7 = tpu.iota {dimensions = array<i32: 1>} : vector<16x40xi32>
    %8 = vector.broadcast %4 : vector<16x1xi32> to vector<16x40xi32>
    %9 = arith.cmpi eq, %7, %8 : vector<16x40xi32>
    %cst = arith.constant dense<0xFF800000> : vector<16xf32>
    %10 = vector.multi_reduction <maximumf>, %3, %cst [1] : vector<16x40xf32> to vector<16xf32>
    %11 = vector.shape_cast %10 : vector<16xf32> to vector<16x1xf32>
    %12 = vector.broadcast %11 : vector<16x1xf32> to vector<16x40xf32>
    %13 = arith.subf %3, %12 : vector<16x40xf32>
    %14 = math.exp %13 : vector<16x40xf32>
    %cst_5 = arith.constant dense<0.000000e+00> : vector<16xf32>
    %15 = vector.multi_reduction <add>, %14, %cst_5 [1] : vector<16x40xf32> to vector<16xf32>
    %16 = vector.shape_cast %15 : vector<16xf32> to vector<16x1xf32>
    %17 = math.log %16 : vector<16x1xf32>
    %cst_6 = arith.constant 0.000000e+00 : f32
    %18 = vector.broadcast %cst_6 : f32 to vector<16x40xf32>
    %19 = arith.select %9, %13, %18 : vector<16x40xi1>, vector<16x40xf32>
    %cst_7 = arith.constant dense<0.000000e+00> : vector<16xf32>
    %20 = vector.multi_reduction <add>, %19, %cst_7 [1] : vector<16x40xf32> to vector<16xf32>
    %21 = vector.shape_cast %20 : vector<16xf32> to vector<16x1xf32>
    %22 = arith.subf %17, %21 : vector<16x1xf32>
    %cst_8 = arith.constant dense<0.000000e+00> : vector<16xf32>
    %23 = vector.multi_reduction <add>, %13, %cst_8 [1] : vector<16x40xf32> to vector<16xf32>
    %24 = vector.shape_cast %23 : vector<16xf32> to vector<16x1xf32>
    %cst_9 = arith.constant 2.500000e-02 : f32
    %25 = vector.broadcast %cst_9 : f32 to vector<16x1xf32>
    %26 = arith.mulf %24, %25 : vector<16x1xf32>
    %27 = arith.subf %17, %26 : vector<16x1xf32>
    %cst_10 = arith.constant 0.899999976 : f32
    %28 = vector.broadcast %cst_10 : f32 to vector<16x1xf32>
    %29 = arith.mulf %28, %22 : vector<16x1xf32>
    %cst_11 = arith.constant 1.000000e-01 : f32
    %30 = vector.broadcast %cst_11 : f32 to vector<16x1xf32>
    %31 = arith.mulf %30, %27 : vector<16x1xf32>
    %32 = arith.addf %29, %31 : vector<16x1xf32>
    %cst_12 = arith.constant 0.000000e+00 : f32
    %33 = vector.broadcast %cst_12 : f32 to vector<16x1xf32>
    %34 = arith.subf %33, %22 : vector<16x1xf32>
    %35 = math.exp %34 : vector<16x1xf32>
    %cst_13 = arith.constant 1.000000e+00 : f32
    %36 = vector.broadcast %cst_13 : f32 to vector<16x1xf32>
    %37 = arith.subf %36, %35 : vector<16x1xf32>
    %38 = arith.mulf %37, %37 : vector<16x1xf32>
    %cst_14 = arith.constant 2.500000e-01 : f32
    %39 = vector.broadcast %cst_14 : f32 to vector<16x1xf32>
    %40 = arith.mulf %39, %38 : vector<16x1xf32>
    %41 = arith.mulf %40, %22 : vector<16x1xf32>
    %c0_15 = arith.constant 0 : index
    %c0_16 = arith.constant 0 : index
    %42 = vector.load %arg2[%c0_15, %c0_16] : memref<16x40xf32, #tpu.memory_space<vmem>>, vector<16x40xf32>
    %cst_17 = arith.constant dense<0xFF800000> : vector<16xf32>
    %43 = vector.multi_reduction <maximumf>, %42, %cst_17 [1] : vector<16x40xf32> to vector<16xf32>
    %44 = vector.shape_cast %43 : vector<16xf32> to vector<16x1xf32>
    %45 = vector.broadcast %44 : vector<16x1xf32> to vector<16x40xf32>
    %46 = arith.subf %42, %45 : vector<16x40xf32>
    %47 = math.exp %46 : vector<16x40xf32>
    %cst_18 = arith.constant dense<0.000000e+00> : vector<16xf32>
    %48 = vector.multi_reduction <add>, %47, %cst_18 [1] : vector<16x40xf32> to vector<16xf32>
    %49 = vector.shape_cast %48 : vector<16xf32> to vector<16x1xf32>
    %50 = math.log %49 : vector<16x1xf32>
    %cst_19 = arith.constant 0.000000e+00 : f32
    %51 = vector.broadcast %cst_19 : f32 to vector<16x40xf32>
    %52 = arith.select %9, %46, %51 : vector<16x40xi1>, vector<16x40xf32>
    %cst_20 = arith.constant dense<0.000000e+00> : vector<16xf32>
    %53 = vector.multi_reduction <add>, %52, %cst_20 [1] : vector<16x40xf32> to vector<16xf32>
    %54 = vector.shape_cast %53 : vector<16xf32> to vector<16x1xf32>
    %55 = arith.subf %50, %54 : vector<16x1xf32>
    %56 = tpu.iota {dimensions = array<i32: 1>} : vector<16x4xi32>
    %c0_i32_21 = arith.constant 0 : i32
    %57 = vector.broadcast %c0_i32_21 : i32 to vector<16x4xi32>
    %58 = arith.cmpi eq, %56, %57 : vector<16x4xi32>
    %c1_i32 = arith.constant 1 : i32
    %59 = vector.broadcast %c1_i32 : i32 to vector<16x4xi32>
    %60 = arith.cmpi eq, %56, %59 : vector<16x4xi32>
    %c2_i32 = arith.constant 2 : i32
    %61 = vector.broadcast %c2_i32 : i32 to vector<16x4xi32>
    %62 = arith.cmpi eq, %56, %61 : vector<16x4xi32>
    %cst_22 = arith.constant 1.000000e+00 : f32
    %63 = vector.shape_cast %55 : vector<16x1xf32> to vector<16x1xf32>
    %64 = vector.broadcast %63 : vector<16x1xf32> to vector<16x4xf32>
    %65 = vector.broadcast %cst_22 : f32 to vector<16x4xf32>
    %66 = arith.select %62, %64, %65 : vector<16x4xi1>, vector<16x4xf32>
    %67 = vector.shape_cast %41 : vector<16x1xf32> to vector<16x1xf32>
    %68 = vector.broadcast %67 : vector<16x1xf32> to vector<16x4xf32>
    %69 = arith.select %60, %68, %66 : vector<16x4xi1>, vector<16x4xf32>
    %70 = vector.shape_cast %32 : vector<16x1xf32> to vector<16x1xf32>
    %71 = vector.broadcast %70 : vector<16x1xf32> to vector<16x4xf32>
    %72 = arith.select %58, %71, %69 : vector<16x4xi1>, vector<16x4xf32>
    %c0_23 = arith.constant 0 : index
    %c0_24 = arith.constant 0 : index
    %73 = vector.load %arg5[%c0_23, %c0_24] : memref<16x4xf32, #tpu.memory_space<vmem>>, vector<16x4xf32>
    %cst_25 = arith.constant 0.000000e+00 : f32
    %74 = vector.shape_cast %6 : vector<16x1xi1> to vector<16x1xi1>
    %75 = vector.broadcast %74 : vector<16x1xi1> to vector<16x4xi1>
    %76 = vector.broadcast %cst_25 : f32 to vector<16x4xf32>
    %77 = arith.select %75, %72, %76 : vector<16x4xi1>, vector<16x4xf32>
    %78 = arith.addf %73, %77 : vector<16x4xf32>
    %c0_26 = arith.constant 0 : index
    %c0_27 = arith.constant 0 : index
    %79 = vector.load %arg5[%c0_26, %c0_27] : memref<16x4xf32, #tpu.memory_space<vmem>>, vector<16x4xf32>
    tpu.vector_store %arg5[%c0_26, %c0_27], %78 {strides = array<i32>} : memref<16x4xf32, #tpu.memory_space<vmem>>, vector<16x4xf32>,
    %c0_i32_28 = arith.constant 0 : i32
    %80 = arith.cmpi eq, %arg0, %c0_i32_28 : i32
    %81 = arith.extui %80 : i1 to i32
    %c0_i32_29 = arith.constant 0 : i32
    %82 = arith.cmpi ne, %81, %c0_i32_29 : i32
    scf.if %82 {
      %c0_30 = arith.constant 0 : index
      %c0_31 = arith.constant 0 : index
      %83 = vector.load %arg5[%c0_30, %c0_31] : memref<16x4xf32, #tpu.memory_space<vmem>>, vector<16x4xf32>
      %84 = tpu.iota {dimensions = array<i32: 1>} : vector<16x4xi32>
      %cst_32 = arith.constant 0.000000e+00 : f32
      %85 = vector.broadcast %cst_32 : f32 to vector<16x4xf32>
      %c0_i32_33 = arith.constant 0 : i32
      %86 = vector.broadcast %c0_i32_33 : i32 to vector<16x4xi32>
      %87 = arith.cmpi eq, %84, %86 : vector<16x4xi32>
      %88 = arith.select %87, %83, %85 : vector<16x4xi1>, vector<16x4xf32>
      %89 = vector.shape_cast %88 : vector<16x4xf32> to vector<1x16x4xf32>
      %cst_34 = arith.constant dense<0.000000e+00> : vector<1xf32>
      %90 = vector.multi_reduction <add>, %89, %cst_34 [1, 2] : vector<1x16x4xf32> to vector<1xf32>
      %91 = vector.shape_cast %90 : vector<1xf32> to vector<1x1x1xf32>
      %92 = vector.extract %91[0, 0, 0] : f32 from vector<1x1x1xf32>
      %c0_35 = arith.constant 0 : index
      %c0_36 = arith.constant 0 : index
      %93 = memref.load %arg4[%c0_35, %c0_36] : memref<1x4xf32, #tpu.memory_space<smem>>
      memref.store %92, %arg4[%c0_35, %c0_36] : memref<1x4xf32, #tpu.memory_space<smem>>
      %c1_i32_37 = arith.constant 1 : i32
      %94 = vector.broadcast %c1_i32_37 : i32 to vector<16x4xi32>
      %95 = arith.cmpi eq, %84, %94 : vector<16x4xi32>
      %96 = arith.select %95, %83, %85 : vector<16x4xi1>, vector<16x4xf32>
      %97 = vector.shape_cast %96 : vector<16x4xf32> to vector<1x16x4xf32>
      %cst_38 = arith.constant dense<0.000000e+00> : vector<1xf32>
      %98 = vector.multi_reduction <add>, %97, %cst_38 [1, 2] : vector<1x16x4xf32> to vector<1xf32>
      %99 = vector.shape_cast %98 : vector<1xf32> to vector<1x1x1xf32>
      %100 = vector.extract %99[0, 0, 0] : f32 from vector<1x1x1xf32>
      %c0_39 = arith.constant 0 : index
      %c1 = arith.constant 1 : index
      %101 = memref.load %arg4[%c0_39, %c1] : memref<1x4xf32, #tpu.memory_space<smem>>
      memref.store %100, %arg4[%c0_39, %c1] : memref<1x4xf32, #tpu.memory_space<smem>>
      %c2_i32_40 = arith.constant 2 : i32
      %102 = vector.broadcast %c2_i32_40 : i32 to vector<16x4xi32>
      %103 = arith.cmpi eq, %84, %102 : vector<16x4xi32>
      %104 = arith.select %103, %83, %85 : vector<16x4xi1>, vector<16x4xf32>
      %105 = vector.shape_cast %104 : vector<16x4xf32> to vector<1x16x4xf32>
      %cst_41 = arith.constant dense<0.000000e+00> : vector<1xf32>
      %106 = vector.multi_reduction <add>, %105, %cst_41 [1, 2] : vector<1x16x4xf32> to vector<1xf32>
      %107 = vector.shape_cast %106 : vector<1xf32> to vector<1x1x1xf32>
      %108 = vector.extract %107[0, 0, 0] : f32 from vector<1x1x1xf32>
      %c0_42 = arith.constant 0 : index
      %c2 = arith.constant 2 : index
      %109 = memref.load %arg4[%c0_42, %c2] : memref<1x4xf32, #tpu.memory_space<smem>>
      memref.store %108, %arg4[%c0_42, %c2] : memref<1x4xf32, #tpu.memory_space<smem>>
      %c3_i32 = arith.constant 3 : i32
      %110 = vector.broadcast %c3_i32 : i32 to vector<16x4xi32>
      %111 = arith.cmpi eq, %84, %110 : vector<16x4xi32>
      %112 = arith.select %111, %83, %85 : vector<16x4xi1>, vector<16x4xf32>
      %113 = vector.shape_cast %112 : vector<16x4xf32> to vector<1x16x4xf32>
      %cst_43 = arith.constant dense<0.000000e+00> : vector<1xf32>
      %114 = vector.multi_reduction <add>, %113, %cst_43 [1, 2] : vector<1x16x4xf32> to vector<1xf32>
      %115 = vector.shape_cast %114 : vector<1xf32> to vector<1x1x1xf32>
      %116 = vector.extract %115[0, 0, 0] : f32 from vector<1x1x1xf32>
      %c0_44 = arith.constant 0 : index
      %c3 = arith.constant 3 : index
      %117 = memref.load %arg4[%c0_44, %c3] : memref<1x4xf32, #tpu.memory_space<smem>>
      memref.store %116, %arg4[%c0_44, %c3] : memref<1x4xf32, #tpu.memory_space<smem>>
    } else {
    }
    return
  }
  func.func @transform_0(%arg0: i32) -> (i32, i32) {
    %c0_i32 = arith.constant 0 : i32
    %c0_i32_0 = arith.constant 0 : i32
    return %arg0, %c0_i32 : i32, i32
  }
  func.func @transform_1(%arg0: i32) -> (i32, i32) {
    %c0_i32 = arith.constant 0 : i32
    %c0_i32_0 = arith.constant 0 : i32
    return %arg0, %c0_i32 : i32, i32
  }
  func.func @transform_2(%arg0: i32) -> (i32, i32) {
    %c0_i32 = arith.constant 0 : i32
    %c0_i32_0 = arith.constant 0 : i32
    return %arg0, %c0_i32 : i32, i32
  }
  func.func @transform_3(%arg0: i32) -> (i32, i32) {
    %c0_i32 = arith.constant 0 : i32
    %c0_i32_0 = arith.constant 0 : i32
    %c0_i32_1 = arith.constant 0 : i32
    return %c0_i32, %c0_i32_0 : i32, i32
  }
}

</mosaic_0001>

<bundles_post_ra>
// kernel: tpu_custom_call.1
= control target key start
LH: loop header
LB: loop body
LE: loop exit
PB: predicated region body
PF: predicated region fallthrough
CT: control target
= control target key end

     0   :  { %8 = vsyncpa [#allocation4], 0  ;;  %s461_s0 = inlined_call_operand.vmem [shape: f32[16,40], index: 0, kind: input, shape index: {}]   ;;  %s462_s1 = inlined_call_operand.hbm [shape: f32[16,40], index: 1, kind: input, shape index: {}]   ;;  %s463_s2 = inlined_call_operand.vmem [shape: s32[16,1], index: 2, kind: input, shape index: {}]   ;;  %s464_s3 = inlined_call_operand.hbm [shape: f32[1,4], index: 3, kind: output, shape index: {}]  }
   0x1   :  { %9 = vsyncpa [#allocation5], 0  ;;  %s333_s12 = smov [#allocation3]   ;;  %s297_s16 = scalar_lea.hbm %s462_s1, 256 }
   0x2   :  { %s17_s13 = sshll.u32 %s333_s12, 4  ;;  %p298_p0 = scmp.ne.s32.totalorder %s462_s1, %s297_s16  ;;  %s18_s13 = int_to_ptr.vmem [resolvable:$true] %s17_s13 }
   0x3   :  { %p301_p1 = scmp.lt.u32.totalorder %s297_s16, %s462_s1 }
   0x5   :  { %p303_p2 = pnand %p301_p1, %p298_p0 }
   0x7   :  { %306 = shalt.err (!%p303_p2)
}
   0x8   :  { %s307_s21 = scalar_lea.vmem %s18_s13, 256  ;;  %p312_p4 = scmp.lt.s32.totalorder %s18_s13, %s18_s13 }
   0x9   :  { %p308_p3 = scmp.ne.s32.totalorder %s18_s13, %s307_s21  ;;  %p313_p5 = scmp.lt.s32.totalorder %s307_s21, %s307_s21 }
   0xb   :  { %p314_p6 = por %p313_p5, %p312_p4 }
   0xd   :  { %p315_p7 = pnand %p314_p6, %p308_p3 }
   0xf   :  { %318 = shalt.err (!%p315_p7)
}
  0x10   :  { %s334_s22 = smov 128   ;;  %s335_s23 = smov 8  }
  0x11   :  { %23 = dma.hbm_to_vmem [thread:$0]  %s462_s1, 256, %s18_s13, [#allocation4], %s334_s22, %s334_s22, %s335_s23  }
  0x12   :  { %329 = dma.done.wait [#allocation4], 256  }
  0x13   :  { %330 = vsyncadd [#allocation4], 4294967040  ;;  %v336_v0 = vmov 0   ;;  %vm52_vm0 = vcmask 326656   ;;  %v115_v1 = vld [vmem:[#allocation3] sm:$0xff]  ;;  %v36_v2 = vld [vmem:[%s461_s0] sm:$0xff]  ;;  %v42_v18 = vlaneseq }
  0x14   :  { %276 = vset.pattern.permute.xlu1 %v336_v0  ;;  %275 = vset.pattern.permute.xlu0 %v336_v0  ;;  %v116_v3 = vld [vmem:[#allocation3 + $0x8] sm:$0xff]  ;;  %v117_v4 = vsel %vm52_vm0, %v115_v1, -inf  ;;  %v53_v5 = vsel %vm52_vm0, %v36_v2, -inf  ;;  %v37_v6 = vld [vmem:[%s461_s0 + $0x8] sm:$0xff]  ;;  %v38_v10 = vld [vmem:[%s463_s2] sm:$0xff]  ;;  %vm33_vm5 = vcmask 31744  }
  0x15   :  { %118 = vmax.xlane.f32.xlu1 %v117_v4  ;;  %54 = vmax.xlane.f32.xlu0 %v53_v5  ;;  %v120_v7 = vsel %vm52_vm0, %v116_v3, -inf  ;;  %v56_v8 = vsel %vm52_vm0, %v37_v6, -inf  ;;  %v39_v9 = vld [vmem:[%s463_s2 + $0x8] sm:$0xff]  ;;  %v389_v21 = vand.u32 127, %v42_v18  ;;  %vm40_vm3 = vcmp.ne.s32.totalorder %v38_v10, 0  ;;  %s319_s10 = scalar_lea.hbm %s464_s3, 16 }
  0x16   :  { %v160_v45 = vsel %vm40_vm3, 1, %v336_v0  ;;  %vm41_vm4 = vcmp.ne.s32.totalorder %v39_v9, 0  ;;  %v337_v47 = vmov 0.0   ;;  %p320_p8 = scmp.ne.s32.totalorder %s464_s3, %s319_s10  ;;  %p323_p9 = scmp.lt.u32.totalorder %s319_s10, %s464_s3 }
  0x17   :  { %v161_v46 = vsel %vm41_vm4, 1, %v336_v0  ;;  %34 = vst.msk [vmem:[#allocation2] sm:$0xff] %vm33_vm5, %v337_v47  ;;  %35 = vst.msk [vmem:[#allocation2 + $0x8] sm:$0xff] %vm33_vm5, %v337_v47  ;;  %vm151_vm6 = vcmp.eq.s32.totalorder %v389_v21, 2  ;;  %vm150_vm7 = vcmp.eq.s32.totalorder %v389_v21, 1  ;;  %vm149_vm8 = vcmp.eq.s32.totalorder %v389_v21, 0 }
  0x18   :  { %vm230_vm11 = vcmp.eq.s32.totalorder %v389_v21, 3  ;;  %p325_p10 = pnand %p323_p9, %p320_p8 }
  0x19   :  { %121 = vmax.xlane.f32.xlu1 %v120_v7  ;;  %57 = vmax.xlane.f32.xlu0 %v56_v8 }
  0x2a   :  { %48 = vperm.xlu1 %276, %v39_v9  }
  0x2f   :  { %45 = vperm.xlu0 %275, %v38_v10  }
  0xa2   :  { %v55_v11 = vpop.xlane.xlu0 %54  ;;  %v119_v14 = vpop.xlane.xlu1 %118 }
  0xa3   :  { %v59_v12 = vsub.f32 %v36_v2, %v55_v11  ;;  %v123_v25 = vsub.f32 %v115_v1, %v119_v14 }
  0xa5   :  { %v61_v13 = vmul.f32 1.442695, %v59_v12  ;;  %v125_v32 = vmul.f32 1.442695, %v123_v25  ;;  %v85_v37 = vsel %vm52_vm0, %v59_v12, 0.0 }
  0xa6   :  { %v58_v15 = vpop.xlane.xlu0 %57  ;;  %v122_v19 = vpop.xlane.xlu1 %121 }
  0xa7   :  { %v60_v16 = vsub.f32 %v37_v6, %v58_v15  ;;  %277 = vpow2.f32 %v61_v13  ;;  %v124_v33 = vsub.f32 %v116_v3, %v122_v19 }
  0xa9   :  { %v63_v17 = vmul.f32 1.442695, %v60_v16  ;;  %v127_v36 = vmul.f32 1.442695, %v124_v33  ;;  %v88_v38 = vsel %vm52_vm0, %v60_v16, 0.0 }
  0xaa   :  { %v49_v23 = vpop.permute.xlu1 %48 }
  0xab   :  { %279 = vpow2.f32 %v63_v17  ;;  %vm51_vm2 = vcmp.eq.s32.totalorder %v389_v21, %v49_v23 }
  0xac   :  { %v76_v31 = vsel %vm51_vm2, %v60_v16, 0.0  ;;  %281 = vpow2.f32 %v125_v32  ;;  %v140_v39 = vsel %vm51_vm2, %v124_v33, 0.0 }
  0xad   :  { %v80_v35 = vsel %vm52_vm0, %v76_v31, 0.0  ;;  %283 = vpow2.f32 %v127_v36  ;;  %v144_v40 = vsel %vm52_vm0, %v140_v39, 0.0  ;;  %v158_v31 = vld [vmem:[#allocation2] sm:$0xff] }
  0xae   :  { %v46_v20 = vpop.permute.xlu0 %45 }
  0xaf   :  { %vm50_vm1 = vcmp.eq.s32.totalorder %v389_v21, %v46_v20 }
  0xb0   :  { %v75_v26 = vsel %vm50_vm1, %v59_v12, 0.0  ;;  %v139_v30 = vsel %vm50_vm1, %v123_v25, 0.0 }
  0xb1   :  { %v278_v22 = vpop.eup %277  ;;  %v77_v29 = vsel %vm52_vm0, %v75_v26, 0.0  ;;  %v141_v34 = vsel %vm52_vm0, %v139_v30, 0.0 }
  0xb2   :  { %v65_v24 = vsel %vm52_vm0, %v278_v22, 0.0 }
  0xb3   :  { %66 = vadd.xlane.f32.xlu1 %v65_v24 }
  0xb5   :  { %v280_v27 = vpop.eup %279 }
  0xb6   :  { %v68_v28 = vsel %vm52_vm0, %v280_v27, 0.0  ;;  %v282_v41 = vpop.eup %281 }
  0xb7   :  { %69 = vadd.xlane.f32.xlu0 %v68_v28  ;;  %78 = vadd.xlane.f32.xlu1 %v77_v29  ;;  %v129_v42 = vsel %vm52_vm0, %v282_v41, 0.0  ;;  %v284_v43 = vpop.eup %283  ;;  %v159_v41 = vld [vmem:[#allocation2 + $0x8] sm:$0xff] }
  0xb8   :  { %v132_v44 = vsel %vm52_vm0, %v284_v43, 0.0 }
  0xbb   :  { %142 = vadd.xlane.f32.xlu0 %v141_v34  ;;  %81 = vadd.xlane.f32.xlu1 %v80_v35 }
  0xbf   :  { %86 = vadd.xlane.f32.xlu1 %v85_v37 }
  0xc3   :  { %89 = vadd.xlane.f32.xlu1 %v88_v38 }
  0xc7   :  { %145 = vadd.xlane.f32.xlu1 %v144_v40 }
  0xcb   :  { %130 = vadd.xlane.f32.xlu1 %v129_v42 }
  0xcf   :  { %133 = vadd.xlane.f32.xlu1 %v132_v44 }
  0xd1   :  { %163 = vperm.xlu0 %275, %v160_v45  }
  0xe0   :  { %166 = vperm.xlu1 %276, %v161_v46  }
 0x140   :  { %v67_v48 = vpop.xlane.xlu1 %66 }
 0x141   :  { %285 = vlog2.f32 %v67_v48 }
 0x144   :  { %v79_v49 = vpop.xlane.xlu1 %78  ;;  %v70_v50 = vpop.xlane.xlu0 %69 }
 0x145   :  { %287 = vlog2.f32 %v70_v50 }
 0x148   :  { %v82_v51 = vpop.xlane.xlu1 %81  ;;  %v143_v13 = vpop.xlane.xlu0 %142 }
 0x14b   :  { %v286_v52 = vpop.eup %285 }
 0x14c   :  { %v72_v53 = vmul.f32 0.6931472, %v286_v52  ;;  %v87_v54 = vpop.xlane.xlu1 %86 }
 0x14d   :  { %v91_v2 = vmul.f32 0.025, %v87_v54 }
 0x14e   :  { %v83_v55 = vsub.f32 %v72_v53, %v79_v49 }
 0x14f   :  { %v288_v56 = vpop.eup %287  ;;  %v93_v6 = vsub.f32 %v72_v53, %v91_v2 }
 0x150   :  { %v101_v57 = vsub.f32 0.0, %v83_v55  ;;  %v74_v58 = vmul.f32 0.6931472, %v288_v56  ;;  %v90_v59 = vpop.xlane.xlu1 %89  ;;  %v95_v14 = vmul.f32 0.9, %v83_v55  ;;  %v164_v25 = vpop.permute.xlu0 %163 }
 0x151   :  { %v92_v7 = vmul.f32 0.025, %v90_v59  ;;  %v97_v15 = vmul.f32 0.1, %v93_v6  ;;  %vm168_vm9 = vcmp.eq.s32.totalorder %v164_v25, 1 }
 0x152   :  { %v103_v60 = vmul.f32 1.442695, %v101_v57  ;;  %v84_v61 = vsub.f32 %v74_v58, %v82_v51 }
 0x153   :  { %v94_v16 = vsub.f32 %v74_v58, %v92_v7  ;;  %v99_v26 = vadd.f32 %v97_v15, %v95_v14 }
 0x154   :  { %289 = vpow2.f32 %v103_v60  ;;  %v102_v62 = vsub.f32 0.0, %v84_v61  ;;  %v146_v63 = vpop.xlane.xlu1 %145  ;;  %v96_v23 = vmul.f32 0.9, %v84_v61 }
 0x155   :  { %v98_v27 = vmul.f32 0.1, %v94_v16 }
 0x156   :  { %v105_v0 = vmul.f32 1.442695, %v102_v62 }
 0x157   :  { %v100_v37 = vadd.f32 %v98_v27, %v96_v23 }
 0x158   :  { %291 = vpow2.f32 %v105_v0  ;;  %v131_v1 = vpop.xlane.xlu1 %130 }
 0x159   :  { %293 = vlog2.f32 %v131_v1 }
 0x15c   :  { %v134_v3 = vpop.xlane.xlu1 %133 }
 0x15d   :  { %295 = vlog2.f32 %v134_v3 }
 0x15e   :  { %v290_v4 = vpop.eup %289 }
 0x15f   :  { %v107_v5 = vsub.f32 1.0, %v290_v4 }
 0x160   :  { %v167_v35 = vpop.permute.xlu1 %166 }
 0x161   :  { %v109_v8 = vmul.f32 %v107_v5, %v107_v5  ;;  %vm169_vm10 = vcmp.eq.s32.totalorder %v167_v35, 1 }
 0x162   :  { %v292_v9 = vpop.eup %291 }
 0x163   :  { %v294_v10 = vpop.eup %293  ;;  %v111_v11 = vmul.f32 0.25, %v109_v8  ;;  %v108_v12 = vsub.f32 1.0, %v292_v9 }
 0x164   :  { %v136_v17 = vmul.f32 0.6931472, %v294_v10 }
 0x165   :  { %v110_v18 = vmul.f32 %v108_v12, %v108_v12  ;;  %v113_v22 = vmul.f32 %v111_v11, %v83_v55 }
 0x166   :  { %v147_v19 = vsub.f32 %v136_v17, %v143_v13 }
 0x167   :  { %v296_v20 = vpop.eup %295  ;;  %v112_v24 = vmul.f32 0.25, %v110_v18 }
 0x168   :  { %v152_v28 = vsel %vm151_vm6, %v147_v19, 1.0  ;;  %v138_v29 = vmul.f32 0.6931472, %v296_v20 }
 0x169   :  { %v154_v30 = vsel %vm150_vm7, %v113_v22, %v152_v28  ;;  %v114_v34 = vmul.f32 %v112_v24, %v84_v61 }
 0x16a   :  { %v148_v32 = vsub.f32 %v138_v29, %v146_v63  ;;  %v156_v33 = vsel %vm149_vm8, %v99_v26, %v154_v30 }
 0x16b   :  { %v170_v36 = vsel %vm168_vm9, %v156_v33, 0.0 }
 0x16c   :  { %v153_v38 = vsel %vm151_vm6, %v148_v32, 1.0  ;;  %v172_v39 = vadd.f32 %v170_v36, %v158_v31 }
 0x16d   :  { %v155_v40 = vsel %vm150_vm7, %v114_v34, %v153_v38 }
 0x16e   :  { %v157_v42 = vsel %vm149_vm8, %v100_v37, %v155_v40  ;;  %175 = vst.msk [vmem:[#allocation2] sm:$0xff] %vm33_vm5, %v172_v39 }
 0x16f   :  { %v171_v43 = vsel %vm169_vm10, %v157_v42, 0.0 }
 0x170   :  { %v173_v44 = vadd.f32 %v171_v43, %v159_v41 }
 0x172   :  { %176 = vst.msk [vmem:[#allocation2 + $0x8] sm:$0xff] %vm33_vm5, %v173_v44 }
 0x175   :  { %v180_v45 = vld [vmem:[#allocation2] sm:$0xff] }
 0x176   :  { %v198_v46 = vsel %vm150_vm7, %v180_v45, 0.0  ;;  %v182_v47 = vsel %vm149_vm8, %v180_v45, 0.0  ;;  %v214_v59 = vsel %vm151_vm6, %v180_v45, 0.0  ;;  %v231_v60 = vsel %vm230_vm11, %v180_v45, 0.0 }
 0x177   :  { %v200_v53 = vsel %vm33_vm5, %v198_v46, 0.0  ;;  %v184_v55 = vsel %vm33_vm5, %v182_v47, 0.0  ;;  %v216_v63 = vsel %vm33_vm5, %v214_v59, 0.0  ;;  %v233_v0 = vsel %vm33_vm5, %v231_v60, 0.0 }
 0x179   :  { %v181_v48 = vld [vmem:[#allocation2 + $0x8] sm:$0xff] }
 0x17a   :  { %v199_v49 = vsel %vm150_vm7, %v181_v48, 0.0  ;;  %v183_v50 = vsel %vm149_vm8, %v181_v48, 0.0  ;;  %v215_v51 = vsel %vm151_vm6, %v181_v48, 0.0  ;;  %v232_v52 = vsel %vm230_vm11, %v181_v48, 0.0 }
 0x17b   :  { %v201_v54 = vsel %vm33_vm5, %v199_v49, 0.0  ;;  %v185_v56 = vsel %vm33_vm5, %v183_v50, 0.0  ;;  %v217_v61 = vsel %vm33_vm5, %v215_v51, 0.0  ;;  %v234_v62 = vsel %vm33_vm5, %v232_v52, 0.0 }
 0x17c   :  { %v202_v57 = vadd.f32 %v201_v54, %v200_v53  ;;  %v186_v58 = vadd.f32 %v185_v56, %v184_v55  ;;  %v218_v1 = vadd.f32 %v217_v61, %v216_v63  ;;  %v235_v2 = vadd.f32 %v234_v62, %v233_v0 }
 0x17e   :  { %203 = vadd.xlane.f32.xlu0 %v202_v57  ;;  %187 = vadd.xlane.f32.xlu1 %v186_v58 }
 0x182   :  { %219 = vadd.xlane.f32.xlu0 %v218_v1  ;;  %236 = vadd.xlane.f32.xlu1 %v235_v2 }
 0x20b   :  { %v204_v3 = vpop.xlane.xlu0 %203  ;;  %v188_v4 = vpop.xlane.xlu1 %187 }
 0x20c   :  { %v205_v5 = vrot.slane %v204_v3, 4  ;;  %v189_v21 = vrot.slane %v188_v4, 4 }
 0x20e   :  { %v206_v6 = vadd.f32 %v205_v5, %v204_v3  ;;  %v190_v7 = vadd.f32 %v189_v21, %v188_v4 }
 0x20f   :  { %v220_v8 = vpop.xlane.xlu0 %219  ;;  %v237_v9 = vpop.xlane.xlu1 %236 }
 0x210   :  { %v207_v10 = vrot.slane %v206_v6, 2  ;;  %v191_v11 = vrot.slane %v190_v7, 2  ;;  %v221_v12 = vrot.slane %v220_v8, 4  ;;  %v238_v13 = vrot.slane %v237_v9, 4 }
 0x212   :  { %v222_v14 = vadd.f32 %v221_v12, %v220_v8  ;;  %v239_v15 = vadd.f32 %v238_v13, %v237_v9  ;;  %v192_v16 = vadd.f32 %v191_v11, %v190_v7  ;;  %v208_v17 = vadd.f32 %v207_v10, %v206_v6 }
 0x214   :  { %v223_v18 = vrot.slane %v222_v14, 2  ;;  %v240_v19 = vrot.slane %v239_v15, 2  ;;  %v193_v20 = vrot.slane %v192_v16, 1  ;;  %v209_v22 = vrot.slane %v208_v17, 1 }
 0x216   :  { %v224_v23 = vadd.f32 %v223_v18, %v222_v14  ;;  %v241_v24 = vadd.f32 %v240_v19, %v239_v15  ;;  %v194_v25 = vadd.f32 %v193_v20, %v192_v16  ;;  %v210_v26 = vadd.f32 %v209_v22, %v208_v17 }
 0x218   :  { %261 = vpush %v194_v25  ;;  %v225_v27 = vrot.slane %v224_v23, 1  ;;  %v242_v28 = vrot.slane %v241_v24, 1 }
 0x219   :  { %263 = vpush %v210_v26 }
 0x21a   :  { %v226_v29 = vadd.f32 %v225_v27, %v224_v23  ;;  %v243_v30 = vadd.f32 %v242_v28, %v241_v24 }
 0x21c   :  { %265 = vpush %v226_v29 }
 0x21d   :  { %267 = vpush %v243_v30 }
 0x249   :  { %s262_s0 = spop %261 }
 0x24a   :  { %197 = sst [smem:[#allocation6]] %s262_s0  ;;  %s264_s2 = spop %263 }
 0x24b   :  { %213 = sst [smem:[#allocation6 + $0x1]] %s264_s2 }
 0x24d   :  { %s266_s6 = spop %265 }
 0x24e   :  { %229 = sst [smem:[#allocation6 + $0x2]] %s266_s6  ;;  %s268_s7 = spop %267 }
 0x24f   :  { %246 = sst [smem:[#allocation6 + $0x3]] %s268_s7 }
 0x250   :  { %328 = shalt.err (!%p325_p10)
}
 0x251   :  { %s338_s15 = smov [#allocation6]  }
 0x252   :  { %254 = dma.smem_to_hbm %s338_s15, 16, %s464_s3, [#allocation5]  }
 0x253   :  { %331 = dma.done.wait [#allocation5], 16  }
 0x254   :  { %332 = vsyncadd [#allocation5], 4294967280 }
 0x255   :  { %258 = sfence }
 0x256   :  { %259 = vsyncpa [#allocation4], 1 }
 0x257   :  { %260 = vsyncpa [#allocation5], 1 }

</bundles_post_ra>
